<compile_context>
chip_gen: v5e
topology: v5e:2x2
jax: 0.10.0
libtpu: 0.0.40
codegen_flags: <defaults>
</compile_context>

<pallas_src>
import jax
import jax.numpy as jnp
from jax.experimental import pallas as pl
from jax.experimental.pallas import tpu as pltpu

LN_EPS = 1e-5


def _round_up(x, m):
    return -(-x // m) * m


def _vmem_capacity_bytes():
    try:
        return int(pltpu.get_tpu_info().vmem_capacity_bytes)
    except Exception:
        return 64 * 1024 * 1024  # conservative fallback (v7x per-TC VMEM)


def _layernorm_f32(x_ref, gamma_ref, beta_ref):
    """LayerNorm over the last dim, computed in f32."""
    x = x_ref[...].astype(jnp.float32)
    mean = jnp.mean(x, axis=-1, keepdims=True)
    centered = x - mean
    var = jnp.mean(centered * centered, axis=-1, keepdims=True)
    inv = jax.lax.rsqrt(var + LN_EPS)                 # EUP slot, ~free
    y = centered * inv
    return y * gamma_ref[...].astype(jnp.float32) + beta_ref[...].astype(jnp.float32)


def _prenorm_resident_kernel(x_ref, gamma_ref, beta_ref, w_ref, bias_ref, o_ref):
    # 1-D grid over row blocks; the full (D, D) weight is VMEM-resident
    # (single-buffered constant), so every grid step is LN + one MXU matmul.
    y = _layernorm_f32(x_ref, gamma_ref, beta_ref).astype(w_ref.dtype)
    out = jnp.dot(y, w_ref[...], preferred_element_type=jnp.float32)
    out = out + bias_ref[...].astype(jnp.float32)
    o_ref[...] = out.astype(o_ref.dtype)


def _prenorm_stream_kernel(x_ref, gamma_ref, beta_ref, w_ref, bias_ref, o_ref, y_ref):
    # 2-D grid (row block i, output-column block j); LN runs once per row block
    # (j == 0) and is cached in VMEM scratch in the weight dtype; every column
    # step is then a single MXU matmul against a streamed weight column tile.
    @pl.when(pl.program_id(1) == 0)
    def _():
        y_ref[...] = _layernorm_f32(x_ref, gamma_ref, beta_ref).astype(y_ref.dtype)

    out = jnp.dot(y_ref[...], w_ref[...], preferred_element_type=jnp.float32)
    out = out + bias_ref[...].astype(jnp.float32)
    o_ref[...] = out.astype(o_ref.dtype)


def _const_spec(shape, index_map):
    # Constant block (index never changes): single-buffer it to save VMEM.
    return pl.BlockSpec(shape, index_map, pipeline_mode=pl.Buffered(1))


@jax.jit
def prenorm(x, gamma, beta, w, bias):
    """PreNorm(LayerNorm(D) -> Linear(D, D)) applied to a [B, S, D] input."""
    B, S, D = x.shape
    N = B * S
    x2 = x.reshape(N, D)
    gamma2 = gamma.reshape(1, D)
    beta2 = beta.reshape(1, D)
    bias2 = bias.reshape(1, D)

    x_item = jnp.dtype(x.dtype).itemsize
    w_item = jnp.dtype(w.dtype).itemsize

    cap = _vmem_capacity_bytes()
    vmem_limit = min(int(cap * 0.75), 100 * 1024 * 1024)   # 96 MiB v5e/v6e, 48 MiB v7x
    tile_budget = int(vmem_limit * 0.8)                    # headroom for compiler scratch

    # ------------------------------------------------------------------
    # Resident-weight path: single grid axis over rows, weight fetched once.
    # ------------------------------------------------------------------
    w_bytes = D * D * w_item
    # Per-row VMEM: 2x double-buffered x block + 2x out block + ~2 f32 temporaries.
    per_row = D * (2 * x_item + 2 * x_item + 2 * 4)
    tm_res = (tile_budget - w_bytes) // per_row if tile_budget > w_bytes else 0
    tm_res = min(int(tm_res), 512, _round_up(N, 8))
    tm_res = (tm_res // 8) * 8

    if tm_res >= 8:
        tm = tm_res
        grid = (pl.cdiv(N, tm),)   # ragged last block: OOB rows read garbage,
                                   # their stores are masked -> never observable
        cost = pl.CostEstimate(
            flops=2 * N * D * D,
            transcendentals=N,                              # one rsqrt per row
            bytes_accessed=2 * N * D * x_item + w_bytes + 3 * D * 4,
        )
        out2 = pl.pallas_call(
            _prenorm_resident_kernel,
            out_shape=jax.ShapeDtypeStruct((N, D), x.dtype),
            grid_spec=pltpu.PrefetchScalarGridSpec(
                num_scalar_prefetch=0,
                grid=grid,
                in_specs=[
                    pl.BlockSpec((tm, D), lambda i: (i, 0)),     # x rows (streamed)
                    _const_spec((1, D), lambda i: (0, 0)),       # gamma
                    _const_spec((1, D), lambda i: (0, 0)),       # beta
                    _const_spec((D, D), lambda i: (0, 0)),       # resident weight
                    _const_spec((1, D), lambda i: (0, 0)),       # bias
                ],
                out_specs=pl.BlockSpec((tm, D), lambda i: (i, 0)),
            ),
            compiler_params=pltpu.CompilerParams(
                dimension_semantics=("parallel",),               # both TCs on v7x
                vmem_limit_bytes=vmem_limit,
            ),
            cost_estimate=cost,
        )(x2, gamma2, beta2, w, bias2)
        return out2.reshape(B, S, D)

    # ------------------------------------------------------------------
    # Streaming fallback: weight too large to keep resident in VMEM.
    # ------------------------------------------------------------------
    tn = D
    for cand in (1024, 512, 256, 128):                       # lane-dense, amortizes step cost
        if D % cand == 0:
            tn = cand
            break

    # Per-row VMEM: 2x x block + LN scratch (w dtype) + f32 temps + 2x out tile.
    per_row = D * (2 * x_item + w_item + 2 * 4) + 2 * tn * x_item
    fixed = 2 * D * tn * w_item + 2 * tn * 4                 # double-buffered weight tile + bias
    tm = (tile_budget - fixed) // per_row if tile_budget > fixed else 8
    tm = min(int(tm), 1024, _round_up(N, 8))
    tm = max(8, (tm // 8) * 8)

    n_row_blocks = pl.cdiv(N, tm)
    grid = (n_row_blocks, D // tn)
    cost = pl.CostEstimate(
        flops=2 * N * D * D,
        transcendentals=N,
        bytes_accessed=2 * N * D * x_item
        + n_row_blocks * D * D * w_item                      # weight re-streamed per row block
        + 3 * D * 4,
    )
    out2 = pl.pallas_call(
        _prenorm_stream_kernel,
        out_shape=jax.ShapeDtypeStruct((N, D), x.dtype),
        grid_spec=pltpu.PrefetchScalarGridSpec(
            num_scalar_prefetch=0,
            grid=grid,
            in_specs=[
                pl.BlockSpec((tm, D), lambda i, j: (i, 0)),      # x rows
                _const_spec((1, D), lambda i, j: (0, 0)),        # gamma
                _const_spec((1, D), lambda i, j: (0, 0)),        # beta
                pl.BlockSpec((D, tn), lambda i, j: (0, j)),      # weight column tile
                pl.BlockSpec((1, tn), lambda i, j: (0, j)),      # bias column tile
            ],
            out_specs=pl.BlockSpec((tm, tn), lambda i, j: (i, j)),
            scratch_shapes=[pltpu.VMEM((tm, D), w.dtype)],       # cached LayerNorm output
        ),
        compiler_params=pltpu.CompilerParams(
            dimension_semantics=("parallel", "arbitrary"),
            vmem_limit_bytes=vmem_limit,
        ),
        cost_estimate=cost,
    )(x2, gamma2, beta2, w, bias2)
    return out2.reshape(B, S, D)


def reference(x, gamma, beta, w, bias):
    xf = x.astype(jnp.float32)
    mean = jnp.mean(xf, axis=-1, keepdims=True)
    var = jnp.mean((xf - mean) ** 2, axis=-1, keepdims=True)
    y = (xf - mean) * jax.lax.rsqrt(var + LN_EPS) * gamma.astype(jnp.float32) \
        + beta.astype(jnp.float32)
    # Mirror the kernel's precision discipline: activations cast to the weight
    # dtype, MXU accumulation in f32.
    out = jnp.dot(y.astype(w.dtype), w, preferred_element_type=jnp.float32)
    return (out + bias.astype(jnp.float32)).astype(x.dtype)


if __name__ == "__main__":
    B, S, D = 2, 8, 128  # batch, seq, hidden dim (lane-dense D)

    key = jax.random.PRNGKey(0)
    kx, kw, kg, kb, kbias = jax.random.split(key, 5)

    x = jax.random.normal(kx, (B, S, D), dtype=jnp.float32)

    # PyTorch-convention (D,) parameter vectors (wrapper reshapes them).
    gamma = 1.0 + 0.1 * jax.random.normal(kg, (D,), dtype=jnp.float32)
    beta = 0.1 * jax.random.normal(kb, (D,), dtype=jnp.float32)
    # fn = Linear(D, D): bf16 weights feed the MXU in a single pass (f32 accum).
    w = (jax.random.normal(kw, (D, D), dtype=jnp.float32) / jnp.sqrt(D)).astype(jnp.bfloat16)
    bias = 0.1 * jax.random.normal(kbias, (D,), dtype=jnp.float32)

    out = prenorm(x, gamma, beta, w, bias)
    jax.block_until_ready(out)

    ref = reference(x, gamma, beta, w, bias)
    assert out.shape == (B, S, D)
    assert jnp.allclose(out, ref, atol=2e-3, rtol=2e-3), "mismatch vs reference"

    print("KERNEL_OK")
</pallas_src>

<mosaic_0001>
module attributes {stable_mosaic.version = 11 : i64} {
  func.func @_prenorm_resident_kernel(%arg0: i32, %arg1: memref<16x128xf32, #tpu.memory_space<vmem>>, %arg2: memref<1x128xf32, #tpu.memory_space<vmem>>, %arg3: memref<1x128xf32, #tpu.memory_space<vmem>>, %arg4: memref<128x128xbf16, #tpu.memory_space<vmem>>, %arg5: memref<1x128xf32, #tpu.memory_space<vmem>>, %arg6: memref<16x128xf32, #tpu.memory_space<vmem>>) attributes {dimension_semantics = [#tpu.dimension_semantics<parallel>], iteration_bounds = array<i64: 1>, scalar_prefetch = 0 : i64, scratch_operands = 0 : i64, tpu.core_type = #tpu.core_type<tc>, window_params = [{transform_indices = @transform_0, window_bounds = array<i64: 16, 128>}, {pipeline_mode = #tpu.pipeline_mode<synchronous>, transform_indices = @transform_1, window_bounds = array<i64: 1, 128>}, {pipeline_mode = #tpu.pipeline_mode<synchronous>, transform_indices = @transform_2, window_bounds = array<i64: 1, 128>}, {pipeline_mode = #tpu.pipeline_mode<synchronous>, transform_indices = @transform_3, window_bounds = array<i64: 128, 128>}, {pipeline_mode = #tpu.pipeline_mode<synchronous>, transform_indices = @transform_4, window_bounds = array<i64: 1, 128>}, {transform_indices = @transform_5, window_bounds = array<i64: 16, 128>}]} {
    %c0 = arith.constant 0 : index
    %c0_0 = arith.constant 0 : index
    %0 = vector.load %arg1[%c0, %c0_0] : memref<16x128xf32, #tpu.memory_space<vmem>>, vector<16x128xf32>
    %cst = arith.constant dense<0.000000e+00> : vector<16xf32>
    %1 = vector.multi_reduction <add>, %0, %cst [1] : vector<16x128xf32> to vector<16xf32>
    %2 = vector.shape_cast %1 : vector<16xf32> to vector<16x1xf32>
    %cst_1 = arith.constant 1.280000e+02 : f32
    %3 = vector.broadcast %cst_1 : f32 to vector<16x1xf32>
    %4 = arith.divf %2, %3 : vector<16x1xf32>
    %5 = vector.broadcast %4 : vector<16x1xf32> to vector<16x128xf32>
    %6 = arith.subf %0, %5 : vector<16x128xf32>
    %7 = arith.mulf %6, %6 : vector<16x128xf32>
    %cst_2 = arith.constant dense<0.000000e+00> : vector<16xf32>
    %8 = vector.multi_reduction <add>, %7, %cst_2 [1] : vector<16x128xf32> to vector<16xf32>
    %9 = vector.shape_cast %8 : vector<16xf32> to vector<16x1xf32>
    %cst_3 = arith.constant 1.280000e+02 : f32
    %10 = vector.broadcast %cst_3 : f32 to vector<16x1xf32>
    %11 = arith.divf %9, %10 : vector<16x1xf32>
    %cst_4 = arith.constant 9.99999974E-6 : f32
    %12 = vector.broadcast %cst_4 : f32 to vector<16x1xf32>
    %13 = arith.addf %11, %12 : vector<16x1xf32>
    %14 = math.rsqrt %13 : vector<16x1xf32>
    %15 = vector.broadcast %14 : vector<16x1xf32> to vector<16x128xf32>
    %16 = arith.mulf %6, %15 : vector<16x128xf32>
    %c0_5 = arith.constant 0 : index
    %c0_6 = arith.constant 0 : index
    %17 = vector.load %arg2[%c0_5, %c0_6] : memref<1x128xf32, #tpu.memory_space<vmem>>, vector<1x128xf32>
    %18 = vector.broadcast %17 : vector<1x128xf32> to vector<16x128xf32>
    %19 = arith.mulf %16, %18 : vector<16x128xf32>
    %c0_7 = arith.constant 0 : index
    %c0_8 = arith.constant 0 : index
    %20 = vector.load %arg3[%c0_7, %c0_8] : memref<1x128xf32, #tpu.memory_space<vmem>>, vector<1x128xf32>
    %21 = vector.broadcast %20 : vector<1x128xf32> to vector<16x128xf32>
    %22 = arith.addf %19, %21 : vector<16x128xf32>
    %23 = arith.truncf %22 : vector<16x128xf32> to vector<16x128xbf16>
    %c0_9 = arith.constant 0 : index
    %c0_10 = arith.constant 0 : index
    %24 = vector.load %arg4[%c0_9, %c0_10] : memref<128x128xbf16, #tpu.memory_space<vmem>>, vector<128x128xbf16>
    %cst_11 = arith.constant dense<0.000000e+00> : vector<16x128xf32>
    %25 = tpu.matmul %23, %24, %cst_11 {dimension_numbers = #tpu.dot_dimension_numbers<[1], [0], [0], [1], [0, 0, 1, 1], [], []>} : vector<16x128xbf16>, vector<128x128xbf16>, vector<16x128xf32> -> vector<16x128xf32>
    %c0_12 = arith.constant 0 : index
    %c0_13 = arith.constant 0 : index
    %26 = vector.load %arg5[%c0_12, %c0_13] : memref<1x128xf32, #tpu.memory_space<vmem>>, vector<1x128xf32>
    %27 = vector.broadcast %26 : vector<1x128xf32> to vector<16x128xf32>
    %28 = arith.addf %25, %27 : vector<16x128xf32>
    %c0_14 = arith.constant 0 : index
    %c0_15 = arith.constant 0 : index
    %29 = vector.load %arg6[%c0_14, %c0_15] : memref<16x128xf32, #tpu.memory_space<vmem>>, vector<16x128xf32>
    tpu.vector_store %arg6[%c0_14, %c0_15], %28 {strides = array<i32>} : memref<16x128xf32, #tpu.memory_space<vmem>>, vector<16x128xf32>,
    return
  }
  func.func @transform_0(%arg0: i32) -> (i32, i32) {
    %c0_i32 = arith.constant 0 : i32
    %c0_i32_0 = arith.constant 0 : i32
    return %arg0, %c0_i32 : i32, i32
  }
  func.func @transform_1(%arg0: i32) -> (i32, i32) {
    %c0_i32 = arith.constant 0 : i32
    %c0_i32_0 = arith.constant 0 : i32
    %c0_i32_1 = arith.constant 0 : i32
    return %c0_i32, %c0_i32_0 : i32, i32
  }
  func.func @transform_2(%arg0: i32) -> (i32, i32) {
    %c0_i32 = arith.constant 0 : i32
    %c0_i32_0 = arith.constant 0 : i32
    %c0_i32_1 = arith.constant 0 : i32
    return %c0_i32, %c0_i32_0 : i32, i32
  }
  func.func @transform_3(%arg0: i32) -> (i32, i32) {
    %c0_i32 = arith.constant 0 : i32
    %c0_i32_0 = arith.constant 0 : i32
    %c0_i32_1 = arith.constant 0 : i32
    return %c0_i32, %c0_i32_0 : i32, i32
  }
  func.func @transform_4(%arg0: i32) -> (i32, i32) {
    %c0_i32 = arith.constant 0 : i32
    %c0_i32_0 = arith.constant 0 : i32
    %c0_i32_1 = arith.constant 0 : i32
    return %c0_i32, %c0_i32_0 : i32, i32
  }
  func.func @transform_5(%arg0: i32) -> (i32, i32) {
    %c0_i32 = arith.constant 0 : i32
    %c0_i32_0 = arith.constant 0 : i32
    return %arg0, %c0_i32 : i32, i32
  }
}

</mosaic_0001>

<bundles_post_ra>
// kernel: prenorm.1
= control target key start
LH: loop header
LB: loop body
LE: loop exit
PB: predicated region body
PF: predicated region fallthrough
CT: control target
= control target key end

     0   :  { %10 = vsyncpa [#allocation3], 0  ;;  %s416_s0 = inlined_call_operand.hbm [shape: f32[16,128], index: 0, kind: input, shape index: {}]   ;;  %s417_s1 = inlined_call_operand.vmem [shape: f32[1,128], index: 1, kind: input, shape index: {}]   ;;  %s418_s2 = inlined_call_operand.vmem [shape: f32[1,128], index: 2, kind: input, shape index: {}]   ;;  %s419_s3 = inlined_call_operand.hbm [shape: bf16[128,128], index: 3, kind: input, shape index: {}]   ;;  %s420_s4 = inlined_call_operand.vmem [shape: f32[1,128], index: 4, kind: input, shape index: {}]   ;;  %s421_s5 = inlined_call_operand.hbm [shape: f32[16,128], index: 5, kind: output, shape index: {}]  }
   0x1   :  { %11 = vsyncpa [#allocation6], 0 }
   0x2   :  { %12 = vsyncpa [#allocation4], 0  ;;  %s17_s20 = sshll.u32 %s416_s0, 4  ;;  %s354_s21 = smov [#allocation2]   ;;  %s18_s20 = int_to_ptr.hbm [resolvable:$true] %s17_s20 }
   0x3   :  { %s19_s22 = sshll.u32 %s354_s21, 4  ;;  %s34_s25 = sshll.u32 %s419_s3, 4  ;;  %s20_s22 = int_to_ptr.vmem [resolvable:$true] %s19_s22  ;;  %s35_s25 = int_to_ptr.hbm [resolvable:$true] %s34_s25 }
   0x4   :  { %s355_s26 = smov 128   ;;  %s356_s27 = smov 8  }
   0x5   :  { %25 = dma.hbm_to_vmem [thread:$0]  %s18_s20, 256, %s20_s22, [#allocation3], %s355_s26, %s355_s26, %s356_s27  }
   0x6   :  { %s357_s28 = smov [#allocation5]   ;;  %s358_s30 = smov 64  }
   0x7   :  { %s36_s29 = sshll.u32 %s357_s28, 4  ;;  %s359_s0 = smov 4   ;;  %s37_s29 = int_to_ptr.vmem [resolvable:$true] %s36_s29 }
   0x8   :  { %42 = dma.hbm_to_vmem [thread:$0]  %s35_s25, 1024, %s37_s29, [#allocation6], %s358_s30, %s358_s30, %s359_s0  }
   0x9   :  { %348 = dma.done.wait [#allocation3], 256  }
   0xa   :  { %349 = vsyncadd [#allocation3], 4294967040 }
   0xb   :  { %350 = dma.done.wait [#allocation6], 1024  }
   0xc   :  { %351 = vsyncadd [#allocation6], 4294966272  ;;  %v53_v0 = vld [vmem:[#allocation2] sm:$0xff]  ;;  %v54_v1 = vld [vmem:[#allocation2 + $0x8] sm:$0xff]  ;;  %v360_v2 = vmov 128.0   ;;  %s205_s14 = sshll.u32 %s421_s5, 4  ;;  %s206_s14 = int_to_ptr.hbm [resolvable:$true] %s205_s14 }
   0xd   :  { %55 = vadd.xlane.f32.xlu0 %v53_v0  ;;  %270 = vrcp.f32 %v360_v2  ;;  %v258_v17 = vld [vmem:[#allocation5 + $0x38] sm:$0xff]  ;;  %v257_v18 = vld [vmem:[#allocation5 + $0x30] sm:$0xff]  ;;  %v256_v19 = vld [vmem:[#allocation5 + $0x28] sm:$0xff] }
   0xe   :  { %183 = vmatpush.bf16.msra.mxu0 %v258_v17  ;;  %v255_v20 = vld [vmem:[#allocation5 + $0x20] sm:$0xff]  ;;  %v254_v21 = vld [vmem:[#allocation5 + $0x18] sm:$0xff]  ;;  %v253_v22 = vld [vmem:[#allocation5 + $0x10] sm:$0xff] }
   0xf   :  { %v252_v23 = vld [vmem:[#allocation5 + $0x8] sm:$0xff]  ;;  %v251_v25 = vld [vmem:[#allocation5] sm:$0xff]  ;;  %v267_v44 = vld [vmem:[%s417_s1] ss:$0 sm:$0xff]  ;;  %s361_s1 = smov [#allocation7]  }
  0x10   :  { %v268_v49 = vld [vmem:[%s418_s2] ss:$0 sm:$0xff]  ;;  %s203_s11 = sshll.u32 %s361_s1, 4  ;;  %s204_s11 = int_to_ptr.vmem [resolvable:$true] %s203_s11 }
  0x11   :  { %v269_v54 = vld [vmem:[%s420_s4] ss:$0 sm:$0xff] }
  0x12   :  { %184 = vmatpush.bf16.msra.mxu0 %v257_v18 }
  0x13   :  { %v271_v3 = vpop.eup %270 }
  0x14   :  { %v60_v4 = vmul.f32 128.0, %v271_v3  ;;  %vm64_vm0 = vweird.f32 %v271_v3 }
  0x15   :  { %57 = vadd.xlane.f32.xlu0 %v54_v1 }
  0x16   :  { %v61_v5 = vsub.f32 1.0, %v60_v4  ;;  %185 = vmatpush.bf16.msra.mxu0 %v256_v19 }
  0x18   :  { %v62_v6 = vmul.f32 %v271_v3, %v61_v5 }
  0x1a   :  { %v63_v7 = vadd.f32 %v271_v3, %v62_v6  ;;  %186 = vmatpush.bf16.msra.mxu0 %v255_v20 }
  0x1c   :  { %v65_v8 = vsel %vm64_vm0, %v271_v3, %v63_v7 }
  0x1e   :  { %187 = vmatpush.bf16.msra.mxu0 %v254_v21 }
  0x22   :  { %188 = vmatpush.bf16.msra.mxu0 %v253_v22 }
  0x26   :  { %189 = vmatpush.bf16.msra.mxu0 %v252_v23 }
  0x2a   :  { %190 = vmatpush.bf16.msra.mxu0 %v251_v25 }
  0x80   :  { %v56_v9 = vpop.xlane.xlu0 %55 }
  0x81   :  { %v66_v10 = vmul.f32 %v65_v8, %v56_v9 }
  0x83   :  { %v68_v11 = vsub.f32 %v53_v0, %v66_v10 }
  0x85   :  { %v70_v12 = vmul.f32 %v68_v11, %v68_v11 }
  0x87   :  { %72 = vadd.xlane.f32.xlu1 %v70_v12 }
  0x88   :  { %v58_v13 = vpop.xlane.xlu0 %57 }
  0x89   :  { %v67_v14 = vmul.f32 %v65_v8, %v58_v13 }
  0x8b   :  { %v69_v15 = vsub.f32 %v54_v1, %v67_v14 }
  0x8d   :  { %v71_v16 = vmul.f32 %v69_v15, %v69_v15 }
  0x8f   :  { %74 = vadd.xlane.f32.xlu1 %v71_v16 }
  0xfa   :  { %v73_v24 = vpop.xlane.xlu1 %72 }
  0xfb   :  { %v76_v26 = vmul.f32 %v73_v24, %v65_v8 }
  0xfd   :  { %v78_v27 = vadd.f32 1e-05, %v76_v26 }
  0xff   :  { %272 = vrsqrt.f32 %v78_v27  ;;  %vm86_vm2 = vweird.f32 %v78_v27 }
 0x102   :  { %v75_v28 = vpop.xlane.xlu1 %74 }
 0x103   :  { %v77_v29 = vmul.f32 %v75_v28, %v65_v8 }
 0x105   :  { %v273_v30 = vpop.eup %272  ;;  %v79_v31 = vadd.f32 1e-05, %v77_v29 }
 0x106   :  { %v81_v32 = vmul.f32 %v273_v30, %v78_v27  ;;  %vm87_vm1 = vweird.f32 %v273_v30 }
 0x107   :  { %274 = vrsqrt.f32 %v79_v31  ;;  %vm88_vm3 = vmor %vm86_vm2, %vm87_vm1  ;;  %vm96_vm5 = vweird.f32 %v79_v31 }
 0x108   :  { %v82_v33 = vmul.f32 %v273_v30, %v81_v32 }
 0x10a   :  { %v83_v34 = vmul.f32 0.5, %v82_v33 }
 0x10c   :  { %v84_v35 = vsub.f32 1.5, %v83_v34 }
 0x10d   :  { %v275_v36 = vpop.eup %274 }
 0x10e   :  { %v85_v37 = vmul.f32 %v273_v30, %v84_v35  ;;  %v91_v38 = vmul.f32 %v275_v36, %v79_v31  ;;  %vm97_vm4 = vweird.f32 %v275_v36 }
 0x10f   :  { %vm98_vm6 = vmor %vm96_vm5, %vm97_vm4 }
 0x110   :  { %v92_v39 = vmul.f32 %v275_v36, %v91_v38  ;;  %v89_v41 = vsel %vm88_vm3, %v273_v30, %v85_v37 }
 0x111   :  { %v100_v43 = vmul.f32 %v89_v41, %v68_v11 }
 0x112   :  { %v93_v40 = vmul.f32 0.5, %v92_v39 }
 0x113   :  { %v106_v48 = vmul.f32 %v267_v44, %v100_v43 }
 0x114   :  { %v94_v42 = vsub.f32 1.5, %v93_v40 }
 0x115   :  { %v112_v51 = vadd.f32 %v268_v49, %v106_v48 }
 0x116   :  { %v95_v45 = vmul.f32 %v275_v36, %v94_v42 }
 0x118   :  { %v99_v46 = vsel %vm98_vm6, %v275_v36, %v95_v45 }
 0x119   :  { %v101_v47 = vmul.f32 %v99_v46, %v69_v15 }
 0x11b   :  { %v107_v50 = vmul.f32 %v267_v44, %v101_v47 }
 0x11d   :  { %v113_v52 = vadd.f32 %v268_v49, %v107_v50 }
 0x11f   :  { %v114_v53 = vpack.c.bf16 %v113_v52, %v112_v51 }
 0x121   :  { %191 = vmatmul.bf16.vlgmr.msra.gmra.mxu0 %v114_v53 }
 0x19e   :  { %v192_v55 = vpop.f32.mrf.mxu0 }
 0x19f   :  { %v193_v56 = vadd.f32 %v269_v54, %v192_v55 }
 0x1a1   :  { %197 = vst [vmem:[#allocation7] sm:$0xff] %v193_v56 }
 0x1a6   :  { %v194_v57 = vpop.f32.mrf.mxu0 }
 0x1a7   :  { %v195_v58 = vadd.f32 %v269_v54, %v194_v57 }
 0x1a9   :  { %198 = vst [vmem:[#allocation7 + $0x8] sm:$0xff] %v195_v58 }
 0x1aa   :  { %211 = dma.vmem_to_hbm [thread:$0]  %s204_s11, 256, %s206_s14, [#allocation4], %s355_s26, %s355_s26, %s356_s27  }
 0x1ab   :  { %352 = dma.done.wait [#allocation4], 256  }
 0x1ac   :  { %353 = vsyncadd [#allocation4], 4294967040 }
 0x1ad   :  { %216 = vsyncpa [#allocation3], 1 }
 0x1ae   :  { %217 = vsyncpa [#allocation6], 1 }
 0x1af   :  { %218 = vsyncpa [#allocation4], 1 }

</bundles_post_ra>
